<compile_context>
chip_gen: v7x
topology: tpu7x:2x2x1
jax: 0.10.0
libtpu: 0.0.40
codegen_flags: <defaults>
</compile_context>

<pallas_src>
import warnings
from functools import partial

import jax
import jax.numpy as jnp
from jax.experimental import pallas as pl
from jax.experimental.pallas import tpu as pltpu

_LANE = 128


def _round_up(x, m):
    return -(-x // m) * m


def _vmem_budget():
    """Generation-aware (per-step working-set budget, vmem_limit_bytes)."""
    try:
        cap = pltpu.get_tpu_info().vmem_capacity_bytes
    except Exception:  # be conservative: v7x has 64 MiB per TensorCore
        cap = 64 * 1024 * 1024
    limit = min(cap // 2, 64 * 1024 * 1024)   # 64 MiB on v5e/v6e, 32 MiB on v7x
    budget = (limit * 3) // 4                 # headroom for compiler scratch
    return budget, limit


def _plan(B, Ch, HW, dtype):
    """Pick the (B, 2, R, L) view of each feature map plus (r_tile, l_tile, grid)."""
    itemsize = jnp.dtype(dtype).itemsize
    quantum = max(8, 32 // itemsize)          # sublane quantum: 8 f32 / 16 bf16 / 32 int8
    budget, limit = _vmem_budget()
    # Per grid step: 2 maps x (2 input halves + 1 output half) x double buffering.
    bytes_per_elem = 2 * 3 * 2 * itemsize
    N = Ch * HW
    min_steps = 4                             # >=2 needed for v7x megacore; 4 gives slack
    target_split = max(1, -(-min_steps // B))

    if N % _LANE == 0:
        # Canonical lane-dense slabs: each contiguous half viewed as (R, 128) rows.
        R, L = N // _LANE, _LANE
        l_tile = L
        max_r = max(quantum, (budget // (bytes_per_elem * L)) // quantum * quantum)
        cap_r = max(quantum, _round_up(-(-R // target_split), quantum))
        r_tile = min(max_r, cap_r)
        if R <= r_tile:
            r_tile = R                        # full extent is always a legal block dim
        grid = (B, pl.cdiv(R, r_tile), 1)
    else:
        # Fallback: natural (Ch, HW) halves, tile the spatial axis in 128-lane chunks.
        R, L = Ch, HW
        r_tile = R
        ch_pad = _round_up(Ch, quantum)
        max_l = max(_LANE, (budget // (bytes_per_elem * ch_pad)) // _LANE * _LANE)
        cap_l = max(_LANE, _round_up(-(-L // target_split), _LANE))
        l_tile = min(max_l, cap_l)
        if L <= l_tile:
            l_tile = L
        grid = (B, 1, pl.cdiv(L, l_tile))

    return (B, 2, R, L), r_tile, l_tile, grid, limit


def _front_layers_kernel(l_ref, r_ref, lo_ref, ro_ref):
    # l_ref / r_ref  : (2, r_tile, l_tile) -- [orig, trans] slabs of one tile
    # lo_ref / ro_ref: (r_tile, l_tile)    -- diff half only (orig half stays put via aliasing)
    lo_ref[...] = l_ref[0] - l_ref[1]
    ro_ref[...] = r_ref[0] - r_ref[1]


@partial(jax.jit, donate_argnums=(0, 1))
def front_layers(left_features, right_features):
    """FrontLayers.forward.  NOTE: both inputs are DONATED (their HBM buffers are
    reused for the outputs via input_output_aliases); do not read them afterwards."""
    assert left_features.shape == right_features.shape
    assert left_features.dtype == right_features.dtype
    B, C, H, W = left_features.shape
    assert C % 2 == 0, "channel dim must be even"
    Ch = C // 2
    HW = H * W

    view, r_tile, l_tile, grid, vmem_limit = _plan(B, Ch, HW, left_features.dtype)
    itemsize = jnp.dtype(left_features.dtype).itemsize

    # Free (bitcast) reshapes: split channels into (orig, trans) halves, flatten each
    # half onto lane-dense rows.
    l4 = left_features.reshape(view)
    r4 = right_features.reshape(view)

    # Input block covers both halves; output block covers only the diff half.
    in_spec = pl.BlockSpec((None, 2, r_tile, l_tile), lambda b, i, j: (b, 0, i, j))
    out_spec = pl.BlockSpec((None, None, r_tile, l_tile), lambda b, i, j: (b, 1, i, j))
    out_sds = jax.ShapeDtypeStruct(view, l4.dtype)

    out_l, out_r = pl.pallas_call(
        _front_layers_kernel,
        grid=grid,
        in_specs=[in_spec, in_spec],
        out_specs=[out_spec, out_spec],
        out_shape=[out_sds, out_sds],
        input_output_aliases={0: 0, 1: 1},
        cost_estimate=pl.CostEstimate(
            flops=2 * B * Ch * HW,                           # one subtract per diff element, 2 maps
            transcendentals=0,
            bytes_accessed=2 * 3 * B * Ch * HW * itemsize,   # read 2 halves + write 1, 2 maps
        ),
        compiler_params=pltpu.CompilerParams(
            dimension_semantics=("parallel", "parallel", "parallel"),
            vmem_limit_bytes=vmem_limit,
        ),
    )(l4, r4)

    return out_l.reshape(B, C, H, W), out_r.reshape(B, C, H, W)


def _reference(x):
    # pure-JAX reference matching the PyTorch module
    Ch = x.shape[1] // 2
    orig = x[:, :Ch]
    trans = x[:, Ch:]
    return jnp.concatenate([orig, orig - trans], axis=1)


if __name__ == "__main__":
    warnings.filterwarnings("ignore", message=".*donated.*")

    key = jax.random.PRNGKey(0)
    k1, k2 = jax.random.split(key)
    B, C, H, W = 2, 4, 16, 16
    left = jax.random.normal(k1, (B, C, H, W), dtype=jnp.float32)
    right = jax.random.normal(k2, (B, C, H, W), dtype=jnp.float32)

    # Compute references first: front_layers donates (clobbers) its inputs.
    ref_l = _reference(left)
    ref_r = _reference(right)
    jax.block_until_ready((ref_l, ref_r))

    out_l, out_r = front_layers(left, right)
    jax.block_until_ready((out_l, out_r))

    assert out_l.shape == (B, C, H, W) and out_r.shape == (B, C, H, W)
    assert jnp.allclose(out_l, ref_l, atol=1e-6)
    assert jnp.allclose(out_r, ref_r, atol=1e-6)
    print("KERNEL_OK")
</pallas_src>

<mosaic_0001>
module attributes {stable_mosaic.version = 11 : i64} {
  func.func @_front_layers_kernel(%arg0: i32, %arg1: i32, %arg2: i32, %arg3: memref<1x2x4x128xf32, #tpu.memory_space<vmem>>, %arg4: memref<1x2x4x128xf32, #tpu.memory_space<vmem>>, %arg5: memref<1x1x4x128xf32, #tpu.memory_space<vmem>>, %arg6: memref<1x1x4x128xf32, #tpu.memory_space<vmem>>) attributes {dimension_semantics = [#tpu.dimension_semantics<parallel>, #tpu.dimension_semantics<parallel>, #tpu.dimension_semantics<parallel>], iteration_bounds = array<i64: 2, 1, 1>, scalar_prefetch = 0 : i64, scratch_operands = 0 : i64, tpu.core_type = #tpu.core_type<tc>, window_params = [{transform_indices = @transform_0, window_bounds = array<i64: 1, 2, 4, 128>}, {transform_indices = @transform_1, window_bounds = array<i64: 1, 2, 4, 128>}, {transform_indices = @transform_2, window_bounds = array<i64: 1, 1, 4, 128>}, {transform_indices = @transform_3, window_bounds = array<i64: 1, 1, 4, 128>}]} {
    %c0 = arith.constant 0 : index
    %c0_0 = arith.constant 0 : index
    %c0_1 = arith.constant 0 : index
    %c0_2 = arith.constant 0 : index
    %0 = vector.load %arg3[%c0, %c0_0, %c0_1, %c0_2] : memref<1x2x4x128xf32, #tpu.memory_space<vmem>>, vector<1x1x4x128xf32>
    %1 = vector.shape_cast %0 : vector<1x1x4x128xf32> to vector<4x128xf32>
    %c0_3 = arith.constant 0 : index
    %c1 = arith.constant 1 : index
    %c0_4 = arith.constant 0 : index
    %c0_5 = arith.constant 0 : index
    %2 = vector.load %arg3[%c0_3, %c1, %c0_4, %c0_5] : memref<1x2x4x128xf32, #tpu.memory_space<vmem>>, vector<1x1x4x128xf32>
    %3 = vector.shape_cast %2 : vector<1x1x4x128xf32> to vector<4x128xf32>
    %4 = arith.subf %1, %3 : vector<4x128xf32>
    %c0_6 = arith.constant 0 : index
    %c0_7 = arith.constant 0 : index
    %c0_8 = arith.constant 0 : index
    %c0_9 = arith.constant 0 : index
    %5 = vector.load %arg5[%c0_6, %c0_7, %c0_8, %c0_9] : memref<1x1x4x128xf32, #tpu.memory_space<vmem>>, vector<1x1x4x128xf32>
    %6 = vector.shape_cast %5 : vector<1x1x4x128xf32> to vector<4x128xf32>
    %7 = vector.shape_cast %4 : vector<4x128xf32> to vector<1x1x4x128xf32>
    tpu.vector_store %arg5[%c0_6, %c0_7, %c0_8, %c0_9], %7 {strides = array<i32>} : memref<1x1x4x128xf32, #tpu.memory_space<vmem>>, vector<1x1x4x128xf32>,
    %c0_10 = arith.constant 0 : index
    %c0_11 = arith.constant 0 : index
    %c0_12 = arith.constant 0 : index
    %c0_13 = arith.constant 0 : index
    %8 = vector.load %arg4[%c0_10, %c0_11, %c0_12, %c0_13] : memref<1x2x4x128xf32, #tpu.memory_space<vmem>>, vector<1x1x4x128xf32>
    %9 = vector.shape_cast %8 : vector<1x1x4x128xf32> to vector<4x128xf32>
    %c0_14 = arith.constant 0 : index
    %c1_15 = arith.constant 1 : index
    %c0_16 = arith.constant 0 : index
    %c0_17 = arith.constant 0 : index
    %10 = vector.load %arg4[%c0_14, %c1_15, %c0_16, %c0_17] : memref<1x2x4x128xf32, #tpu.memory_space<vmem>>, vector<1x1x4x128xf32>
    %11 = vector.shape_cast %10 : vector<1x1x4x128xf32> to vector<4x128xf32>
    %12 = arith.subf %9, %11 : vector<4x128xf32>
    %c0_18 = arith.constant 0 : index
    %c0_19 = arith.constant 0 : index
    %c0_20 = arith.constant 0 : index
    %c0_21 = arith.constant 0 : index
    %13 = vector.load %arg6[%c0_18, %c0_19, %c0_20, %c0_21] : memref<1x1x4x128xf32, #tpu.memory_space<vmem>>, vector<1x1x4x128xf32>
    %14 = vector.shape_cast %13 : vector<1x1x4x128xf32> to vector<4x128xf32>
    %15 = vector.shape_cast %12 : vector<4x128xf32> to vector<1x1x4x128xf32>
    tpu.vector_store %arg6[%c0_18, %c0_19, %c0_20, %c0_21], %15 {strides = array<i32>} : memref<1x1x4x128xf32, #tpu.memory_space<vmem>>, vector<1x1x4x128xf32>,
    return
  }
  func.func @transform_0(%arg0: i32, %arg1: i32, %arg2: i32) -> (i32, i32, i32, i32) {
    %c0_i32 = arith.constant 0 : i32
    %c0_i32_0 = arith.constant 0 : i32
    return %arg0, %c0_i32, %arg1, %arg2 : i32, i32, i32, i32
  }
  func.func @transform_1(%arg0: i32, %arg1: i32, %arg2: i32) -> (i32, i32, i32, i32) {
    %c0_i32 = arith.constant 0 : i32
    %c0_i32_0 = arith.constant 0 : i32
    return %arg0, %c0_i32, %arg1, %arg2 : i32, i32, i32, i32
  }
  func.func @transform_2(%arg0: i32, %arg1: i32, %arg2: i32) -> (i32, i32, i32, i32) {
    %c1_i32 = arith.constant 1 : i32
    %c0_i32 = arith.constant 0 : i32
    return %arg0, %c1_i32, %arg1, %arg2 : i32, i32, i32, i32
  }
  func.func @transform_3(%arg0: i32, %arg1: i32, %arg2: i32) -> (i32, i32, i32, i32) {
    %c1_i32 = arith.constant 1 : i32
    %c0_i32 = arith.constant 0 : i32
    return %arg0, %c1_i32, %arg1, %arg2 : i32, i32, i32, i32
  }
}

</mosaic_0001>

<bundles_post_ra>
// kernel: front_layers.1
= control target key start
LH: loop header
LB: loop body
LE: loop exit
PB: predicated region body
PF: predicated region fallthrough
CT: control target
= control target key end

     0   :  { %s593_s12 = smov 0   ;;  %s595_s13 = smov 0   ;;  %s620_s0 = inlined_call_operand.vmem [shape: f32[2,2,4,128], index: 0, kind: input, shape index: {}, may-alias: {0,2}]   ;;  %s621_s1 = inlined_call_operand.vmem [shape: f32[2,2,4,128], index: 1, kind: input, shape index: {}, may-alias: {1,3}]   ;;  %s622_s2 = inlined_call_operand.vmem [shape: f32[2,2,4,128], index: 2, kind: output, shape index: {0}, may-alias: {0,2}]   ;;  %s623_s3 = inlined_call_operand.vmem [shape: f32[2,2,4,128], index: 3, kind: output, shape index: {1}, may-alias: {1,3}]  }
   0x1   :  { %s597_s14 = smov 0  }
   0x2 LB: > { %s33_s15 = sadd.s32 1, %s567_s13  ;;  %p506_p0 = scmp.ge.s32.totalorder %s571_s14, 1  ;;  %s571_s14 = sphi %s597_s14, %s14_s14   ;;  %s567_s13 = sphi %s595_s13, %s625_s13   ;;  %s563_s12 = sphi %s593_s12, %s624_s12  }
   0x3   : > { %p35_p1 = scmp.ge.s32.totalorder %s33_s15, 2  ;;  %p197_p2 = scmp.lt.s32.totalorder %s571_s14, 3 }
   0x5   : > { %s627_s15 = smov (%p35_p1, %s33_s15), 0  ;;  %p198_p3 = pnand %p506_p0, %p197_p2 }
   0x6   : > { %p257_p4 = scmp.lt.s32.totalorder (!%p198_p3), %s563_s12, 1 }
   0x7   : > { %201 = sbr.rel (%p198_p3) target bundleno = 22 (0x16), region = 28 }
   0xe   : > { %s629_s12 = smov (!%p257_p4, %s563_s12), 1 }
   0xf   : > { %s521_s16 = sshll.u32 %s629_s12, 3 }
  0x10   : > { %s267_s19 = scalar_lea.vmem %s620_s0, %s521_s16  ;;  %s424_s22 = scalar_lea.vmem %s622_s2, %s521_s16 }
  0x11   : > { %v303_v0 = vld [vmem:[%s267_s19] sm:$0xf]  ;;  %v515_v1 = vld [vmem:[%s267_s19 + $0x4] sm:$0xf]  ;;  %s278_s25 = scalar_lea.vmem %s621_s1, %s521_s16  ;;  %s430_s28 = scalar_lea.vmem %s623_s3, %s521_s16 }
  0x12   : > { %v306_v2 = vsub.f32 %v303_v0, %v515_v1  ;;  %v308_v3 = vld [vmem:[%s278_s25] sm:$0xf]  ;;  %v517_v4 = vld [vmem:[%s278_s25 + $0x4] sm:$0xf] }
  0x13   : > { %v311_v5 = vsub.f32 %v308_v3, %v517_v4 }
  0x14   : > { %516 = vst [vmem:[%s424_s22 + $0x4] sm:$0xf] %v306_v2 }
  0x15   : > { %518 = vst [vmem:[%s430_s28 + $0x4] sm:$0xf] %v311_v5 }
  0x16 PF: > { %s14_s14 = sadd.s32 1, %s571_s14   ;;  %s624_s12 = smov %s567_s13 }
  0x17   : > { %p11_p5 = scmp.ge.s32.totalorder %s14_s14, 4   ;;  %s625_s13 = smov %s627_s15 }
  0x19   :  { %13 = sbr.rel (!%p11_p5) target bundleno = 2 (0x2), region = 75 }

</bundles_post_ra>
